<compile_context>
chip_gen: v6e
topology: v6e:2x2x1
jax: 0.10.0
libtpu: 0.0.40
codegen_flags: <defaults>
</compile_context>

<pallas_src>
import math

import jax
import jax.numpy as jnp
from jax.experimental import pallas as pl
from jax.experimental.pallas import tpu as pltpu


# ----------------------------------------------------------------------------
# Kernels
# ----------------------------------------------------------------------------
def _random_coords_vmem_kernel(idx_ref, coords_ref, gps_ref):
    """Small-table fast path.

    idx_ref:    SMEM (B,) int32 row indices.
    coords_ref: VMEM [N, 2] f32 table, already in radians (one contiguous DMA).
    gps_ref:    VMEM [B, 2] f32 output.
    """
    B = gps_ref.shape[0]
    # B is a static shape value -> statically unroll the gather loop.
    for b in range(B):
        gps_ref[b, :] = coords_ref[idx_ref[b], :]


def _random_coords_dma_kernel(idx_ref, coords_hbm, gps_ref, sem):
    """Large-table fallback: per-row DMA gather straight into the output ref.

    idx_ref:    SMEM (B,) int32 row indices.
    coords_hbm: HBM/ANY [N, 2] f32 table (never copied wholesale to VMEM).
    gps_ref:    VMEM [B, 2] f32 output (DMA destination — no VMEM scratch).
    sem:        (B,) DMA semaphores.
    """
    B = gps_ref.shape[0]
    # Build all descriptors once so start() and wait() use the identical
    # src/dst views, then issue-all / wait-all (statically unrolled).
    copies = [
        pltpu.make_async_copy(coords_hbm.at[idx_ref[b]], gps_ref.at[b], sem.at[b])
        for b in range(B)
    ]
    for c in copies:
        c.start()
    for c in copies:
        c.wait()


# ----------------------------------------------------------------------------
# Construction-time constant folding of UnormGPS
# ----------------------------------------------------------------------------
def make_coordinate_table_rad(coordinates_norm):
    """Fold UnormGPS into the module-constant table once at __init__ time:
    clamp to [-1, 1], scale lat (col 0) by pi/2 and lon (col 1) by pi."""
    scale = jnp.array([0.5 * math.pi, math.pi], dtype=jnp.float32)
    return jnp.clip(coordinates_norm.astype(jnp.float32), -1.0, 1.0) * scale


# ----------------------------------------------------------------------------
# Dispatch
# ----------------------------------------------------------------------------
def _fast_path_caps():
    """(raw_table_bytes_cap, padded_vmem_footprint_cap) per TPU generation."""
    try:
        kind = jax.devices()[0].device_kind.lower()
    except Exception:  # pragma: no cover - defensive
        kind = ""
    if "v5" in kind:
        # v5e: ~0.8 TB/s HBM -> whole-table prefetch breaks even early.
        return (2 << 20, 24 << 20)
    if "v7" in kind:
        # v7x: only 64 MiB VMEM (32 MiB scoped default); keep the cap small.
        return (16 << 20, 16 << 20)
    # v6e / default: 128 MiB VMEM, ~1.4 TB/s HBM.
    return (4 << 20, 48 << 20)


def _forward_whole_table(idx, coords_rad, B, padded_vmem_bytes):
    N = coords_rad.shape[0]
    cost = pl.CostEstimate(
        flops=0, transcendentals=0,
        bytes_accessed=int(N * 8 + B * 8 + B * 4))
    return pl.pallas_call(
        _random_coords_vmem_kernel,
        out_shape=jax.ShapeDtypeStruct((B, 2), jnp.float32),
        in_specs=[
            pl.BlockSpec(memory_space=pltpu.MemorySpace.SMEM),   # indices
            pl.BlockSpec(memory_space=pltpu.MemorySpace.VMEM),   # whole table
        ],
        out_specs=pl.BlockSpec(memory_space=pltpu.MemorySpace.VMEM),
        compiler_params=pltpu.CompilerParams(
            vmem_limit_bytes=int(padded_vmem_bytes + (4 << 20))),
        cost_estimate=cost,
    )(idx, coords_rad)


def _forward_row_gather(idx, coords_rad, B):
    cost = pl.CostEstimate(
        flops=0, transcendentals=0,
        bytes_accessed=int(B * 8 * 2 + B * 4))
    return pl.pallas_call(
        _random_coords_dma_kernel,
        out_shape=jax.ShapeDtypeStruct((B, 2), jnp.float32),
        in_specs=[
            pl.BlockSpec(memory_space=pltpu.MemorySpace.SMEM),   # indices
            pl.BlockSpec(memory_space=pl.ANY),                   # table stays in HBM
        ],
        out_specs=pl.BlockSpec(memory_space=pltpu.MemorySpace.VMEM),
        scratch_shapes=[pltpu.SemaphoreType.DMA((B,))],          # one sem per row DMA
        cost_estimate=cost,
    )(idx, coords_rad)


def random_coords_forward(x, coordinates_rad, key, *, force_row_gather=False):
    """JAX/Pallas equivalent of RandomCoords.forward.

    Args:
      x: dict with 'img' of shape [B, C, H, W]; only the batch dim is used.
      coordinates_rad: [N, 2] float32 table already passed through
        make_coordinate_table_rad (UnormGPS pre-applied).
      key: jax.random key; pass a fresh key per call (torch.randint draws
           fresh randomness every forward()).
      force_row_gather: testing hook to exercise the large-table DMA path.
    Returns:
      {'gps': [B, 2] float32} coordinates in radians.
    """
    img = x['img']
    B = img.shape[0]
    N = coordinates_rad.shape[0]

    # torch.randint(0, N, (B,)) equivalent — exact integer sampling.
    idx = jax.random.randint(key, (B,), 0, N, dtype=jnp.int32)

    raw_bytes = N * 2 * 4
    padded_vmem_bytes = pl.cdiv(N, 8) * 8 * 128 * 4   # lane-padded VMEM footprint
    raw_cap, vmem_cap = _fast_path_caps()
    use_fast = (not force_row_gather
                and raw_bytes <= raw_cap
                and padded_vmem_bytes <= vmem_cap)

    if use_fast:
        gps = _forward_whole_table(idx, coordinates_rad, B, padded_vmem_bytes)
    else:
        gps = _forward_row_gather(idx, coordinates_rad, B)
    return {'gps': gps}


if __name__ == "__main__":
    key = jax.random.PRNGKey(0)
    k_lon, k_lat, k_img, k_fwd = jax.random.split(key, 4)

    # Deterministic synthetic "CSV": N coordinates in degrees, normalized the
    # same way the module's __init__ does (lon/180, lat/90, stack [lat, lon]).
    N = 512
    longitudes = jax.random.uniform(k_lon, (N,), minval=-180.0, maxval=180.0) / 180.0
    latitudes = jax.random.uniform(k_lat, (N,), minval=-90.0, maxval=90.0) / 90.0
    coordinates = jnp.stack([latitudes, longitudes], axis=-1).astype(jnp.float32)  # [N, 2]

    # __init__-time constant fold of UnormGPS.
    coords_rad = make_coordinate_table_rad(coordinates)

    # NCHW image features; only the batch dimension matters.
    B = 4
    img = jax.random.normal(k_img, (B, 3, 16, 16), dtype=jnp.float32)
    x = {'img': img}

    # Fast path (whole table in VMEM) — the one that dispatch picks at N=512.
    out_fast = random_coords_forward(x, coords_rad, k_fwd)
    gps_fast = jax.block_until_ready(out_fast['gps'])

    # Large-table fallback path (per-row DMA gather), forced for coverage.
    out_dma = random_coords_forward(x, coords_rad, k_fwd, force_row_gather=True)
    gps_dma = jax.block_until_ready(out_dma['gps'])

    # Reference: recompute the same indices and apply UnormGPS in plain JAX.
    idx_expected = jax.random.randint(k_fwd, (B,), 0, N, dtype=jnp.int32)
    expected = jnp.clip(coordinates[idx_expected], -1.0, 1.0) * jnp.array(
        [0.5 * math.pi, math.pi], dtype=jnp.float32)

    assert gps_fast.shape == (B, 2) and gps_fast.dtype == jnp.float32
    assert gps_dma.shape == (B, 2) and gps_dma.dtype == jnp.float32
    assert jnp.allclose(gps_fast, expected, atol=1e-6)
    assert jnp.allclose(gps_dma, expected, atol=1e-6)

    # sanity: latitudes in [-pi/2, pi/2], longitudes in [-pi, pi]
    assert bool(jnp.all(jnp.abs(gps_fast[:, 0]) <= 0.5 * math.pi + 1e-5))
    assert bool(jnp.all(jnp.abs(gps_fast[:, 1]) <= math.pi + 1e-5))
    print("KERNEL_OK")
</pallas_src>

<mosaic_0001>
module attributes {stable_mosaic.version = 11 : i64} {
  func.func @_random_coords_vmem_kernel(%arg0: memref<4xi32, #tpu.memory_space<smem>>, %arg1: memref<512x2xf32, #tpu.memory_space<vmem>>, %arg2: memref<4x2xf32, #tpu.memory_space<vmem>>) attributes {dimension_semantics = [], scalar_prefetch = 0 : i64, scratch_operands = 0 : i64, tpu.core_type = #tpu.core_type<tc>} {
    %c0 = arith.constant 0 : index
    %0 = memref.load %arg0[%c0] : memref<4xi32, #tpu.memory_space<smem>>
    %1 = arith.index_cast %0 : i32 to index
    %c0_0 = arith.constant 0 : index
    %2 = vector.load %arg1[%1, %c0_0] : memref<512x2xf32, #tpu.memory_space<vmem>>, vector<1x2xf32>
    %3 = vector.shape_cast %2 : vector<1x2xf32> to vector<2xf32>
    %c0_1 = arith.constant 0 : index
    %c0_2 = arith.constant 0 : index
    %4 = vector.load %arg2[%c0_1, %c0_2] : memref<4x2xf32, #tpu.memory_space<vmem>>, vector<1x2xf32>
    %5 = vector.shape_cast %4 : vector<1x2xf32> to vector<2xf32>
    %6 = vector.shape_cast %3 : vector<2xf32> to vector<1x2xf32>
    tpu.vector_store %arg2[%c0_1, %c0_2], %6 {strides = array<i32>} : memref<4x2xf32, #tpu.memory_space<vmem>>, vector<1x2xf32>,
    %c1 = arith.constant 1 : index
    %7 = memref.load %arg0[%c1] : memref<4xi32, #tpu.memory_space<smem>>
    %8 = arith.index_cast %7 : i32 to index
    %c0_3 = arith.constant 0 : index
    %9 = vector.load %arg1[%8, %c0_3] : memref<512x2xf32, #tpu.memory_space<vmem>>, vector<1x2xf32>
    %10 = vector.shape_cast %9 : vector<1x2xf32> to vector<2xf32>
    %c1_4 = arith.constant 1 : index
    %c0_5 = arith.constant 0 : index
    %11 = vector.load %arg2[%c1_4, %c0_5] : memref<4x2xf32, #tpu.memory_space<vmem>>, vector<1x2xf32>
    %12 = vector.shape_cast %11 : vector<1x2xf32> to vector<2xf32>
    %13 = vector.shape_cast %10 : vector<2xf32> to vector<1x2xf32>
    tpu.vector_store %arg2[%c1_4, %c0_5], %13 {strides = array<i32>} : memref<4x2xf32, #tpu.memory_space<vmem>>, vector<1x2xf32>,
    %c2 = arith.constant 2 : index
    %14 = memref.load %arg0[%c2] : memref<4xi32, #tpu.memory_space<smem>>
    %15 = arith.index_cast %14 : i32 to index
    %c0_6 = arith.constant 0 : index
    %16 = vector.load %arg1[%15, %c0_6] : memref<512x2xf32, #tpu.memory_space<vmem>>, vector<1x2xf32>
    %17 = vector.shape_cast %16 : vector<1x2xf32> to vector<2xf32>
    %c2_7 = arith.constant 2 : index
    %c0_8 = arith.constant 0 : index
    %18 = vector.load %arg2[%c2_7, %c0_8] : memref<4x2xf32, #tpu.memory_space<vmem>>, vector<1x2xf32>
    %19 = vector.shape_cast %18 : vector<1x2xf32> to vector<2xf32>
    %20 = vector.shape_cast %17 : vector<2xf32> to vector<1x2xf32>
    tpu.vector_store %arg2[%c2_7, %c0_8], %20 {strides = array<i32>} : memref<4x2xf32, #tpu.memory_space<vmem>>, vector<1x2xf32>,
    %c3 = arith.constant 3 : index
    %21 = memref.load %arg0[%c3] : memref<4xi32, #tpu.memory_space<smem>>
    %22 = arith.index_cast %21 : i32 to index
    %c0_9 = arith.constant 0 : index
    %23 = vector.load %arg1[%22, %c0_9] : memref<512x2xf32, #tpu.memory_space<vmem>>, vector<1x2xf32>
    %24 = vector.shape_cast %23 : vector<1x2xf32> to vector<2xf32>
    %c3_10 = arith.constant 3 : index
    %c0_11 = arith.constant 0 : index
    %25 = vector.load %arg2[%c3_10, %c0_11] : memref<4x2xf32, #tpu.memory_space<vmem>>, vector<1x2xf32>
    %26 = vector.shape_cast %25 : vector<1x2xf32> to vector<2xf32>
    %27 = vector.shape_cast %24 : vector<2xf32> to vector<1x2xf32>
    tpu.vector_store %arg2[%c3_10, %c0_11], %27 {strides = array<i32>} : memref<4x2xf32, #tpu.memory_space<vmem>>, vector<1x2xf32>,
    return
  }
}

</mosaic_0001>

<bundles_post_ra>
// kernel: tpu_custom_call.1
= control target key start
LH: loop header
LB: loop body
LE: loop exit
PB: predicated region body
PF: predicated region fallthrough
CT: control target
= control target key end

     0   :  { %7 = vsyncpa [#allocation3], 0  ;;  %s111_s0 = inlined_call_operand.vmem [shape: s32[4], index: 0, kind: input, shape index: {}]   ;;  %s112_s1 = inlined_call_operand.vmem [shape: f32[512,2], index: 1, kind: input, shape index: {}]   ;;  %s113_s2 = inlined_call_operand.vmem [shape: f32[4,2], index: 2, kind: output, shape index: {}]  }
   0x1   :  { %s14_s11 = sshll.u32 %s111_s0, 4  ;;  %s15_s11 = int_to_ptr.vmem [resolvable:$true] %s14_s11 }
   0x2   :  { %s54_s12 = scalar_lea.vmem %s15_s11, 16  ;;  %p59_p1 = scmp.lt.s32.totalorder %s15_s11, %s15_s11 }
   0x3   :  { %p55_p0 = scmp.ne.s32.totalorder %s15_s11, %s54_s12  ;;  %p60_p2 = scmp.lt.s32.totalorder %s54_s12, %s54_s12 }
   0x5   :  { %p61_p3 = por %p60_p2, %p59_p1 }
   0x7   :  { %p62_p4 = pnand %p61_p3, %p55_p0 }
   0x9   :  { %65 = shalt.err (!%p62_p4)
}
   0xa   :  { %s68_s13 = smov [#allocation2]  }
   0xb   :  { %17 = dma.vmem_to_smem %s15_s11, 16, %s68_s13, [#allocation3]  }
   0xc   :  { %66 = dma.done.wait [#allocation3], 16  }
   0xd   :  { %67 = vsyncadd [#allocation3], 4294967280 }
   0xe   :  { %23 = sfence }
   0xf   :  { %s24_s14 = sld [smem:[#allocation2]]  ;;  %vm27_vm0 = vcmask 8192  }
  0x10   :  { %s50_s15 = sld [smem:[#allocation2 + $0x1]] }
  0x11   :  { %s51_s16 = sld [smem:[#allocation2 + $0x2]] }
  0x12   :  { %s52_s17 = sld [smem:[#allocation2 + $0x3]] }
  0x15   :  { %s25_s19 = scalar_lea.vmem %s112_s1, %s24_s14 }
  0x16   :  { %v26_v0 = vld [vmem:[%s25_s19] sm:$0x1]  ;;  %s30_s22 = scalar_lea.vmem %s112_s1, %s50_s15 }
  0x17   :  { %28 = vst.msk [vmem:[%s113_s2] sm:$0x1] %vm27_vm0, %v26_v0  ;;  %v31_v1 = vld [vmem:[%s30_s22] sm:$0x1]  ;;  %s34_s27 = scalar_lea.vmem %s112_s1, %s51_s16 }
  0x18   :  { %32 = vst.msk [vmem:[%s113_s2 + $0x1] sm:$0x1] %vm27_vm0, %v31_v1  ;;  %v35_v2 = vld [vmem:[%s34_s27] sm:$0x1]  ;;  %s38_s4 = scalar_lea.vmem %s112_s1, %s52_s17 }
  0x19   :  { %36 = vst.msk [vmem:[%s113_s2 + $0x2] sm:$0x1] %vm27_vm0, %v35_v2  ;;  %v39_v3 = vld [vmem:[%s38_s4] sm:$0x1] }
  0x1a   :  { %40 = vst.msk [vmem:[%s113_s2 + $0x3] sm:$0x1] %vm27_vm0, %v39_v3 }
  0x1b   :  { %45 = vsyncpa [#allocation3], 1 }

</bundles_post_ra>
